<compile_context>
chip_gen: v7x
topology: tpu7x:2x2x1
jax: 0.10.0
libtpu: 0.0.40
codegen_flags: <defaults>
</compile_context>

<pallas_src>
import functools
import math

import jax
import jax.numpy as jnp
from jax.experimental import pallas as pl
from jax.experimental.pallas import tpu as pltpu


MASK_NEG = -1e30  # large finite negative for key-padding mask (avoids inf-inf NaN)


# ----------------------------- in-kernel helpers -----------------------------

def _layer_norm(x, gamma, beta, eps):
    mu = jnp.mean(x, axis=-1, keepdims=True)
    var = jnp.mean((x - mu) ** 2, axis=-1, keepdims=True)
    return (x - mu) * jax.lax.rsqrt(var + eps) * gamma + beta


def _gelu(x):
    # exact GELU (erf form), matching torch.nn.GELU() default
    return 0.5 * x * (1.0 + jax.lax.erf(x * (1.0 / math.sqrt(2.0))))


# --------------------------------- kernels -----------------------------------

def _embed_kernel(eps, we_ref, pe_ref, g_ref, b_ref, o_ref):
    # we_ref: (1, S, D) gathered word embeddings for this batch row
    # pe_ref: (1, S, D) position embeddings (shared)
    x = we_ref[0] + pe_ref[0]
    o_ref[0] = _layer_norm(x, g_ref[...], b_ref[...], eps)


def _encoder_layer_kernel(num_heads, eps,
                          xf_ref, mask_ref,
                          wqkv_ref, bqkv_ref, wo_ref, bo_ref,
                          ln1g_ref, ln1b_ref,
                          w1_ref, b1_ref, w2_ref, b2_ref,
                          ln2g_ref, ln2b_ref,
                          o_ref,
                          qkv_scr, ctx_scr):
    # xf_ref : (1, S, D) f32   full sequence for this batch row
    # mask_ref: (1, 1, S) f32  additive key-padding mask (0 / -1e30)
    # qkv_scr: (S, 3D) bf16    fused Q|K|V cache (persists across q tiles)
    # ctx_scr: (tq, D) bf16    per-head contexts assembled for the Wo matmul
    S = xf_ref.shape[1]
    D = xf_ref.shape[2]
    tq = o_ref.shape[1]
    hd = D // num_heads

    # ---- fused QKV projection: once per batch row (first query tile only) ----
    @pl.when(pl.program_id(1) == 0)
    def _():
        x_f = xf_ref[0].astype(jnp.bfloat16)                          # (S, D)
        qkv = jnp.dot(x_f, wqkv_ref[...],
                      preferred_element_type=jnp.float32) + bqkv_ref[...]
        qkv_scr[...] = qkv.astype(jnp.bfloat16)                       # (S, 3D)

    qs = pl.multiple_of(pl.program_id(1) * tq, tq)
    x_q = xf_ref[0, pl.ds(qs, tq), :]                                 # (tq, D) f32

    # hoisted key-padding-mask broadcast (added per head, built once)
    mask_b = jnp.broadcast_to(mask_ref[0], (tq, S))                   # (tq, S)

    # ---- per-head attention: static unrolled loop over heads ----
    for h in range(num_heads):
        qh = qkv_scr[pl.ds(qs, tq), pl.ds(h * hd, hd)]                # (tq, hd) bf16
        kh = qkv_scr[:, pl.ds(D + h * hd, hd)]                        # (S,  hd) bf16
        vh = qkv_scr[:, pl.ds(2 * D + h * hd, hd)]                    # (S,  hd) bf16
        s = jax.lax.dot_general(qh, kh, (((1,), (1,)), ((), ())),
                                preferred_element_type=jnp.float32)   # (tq, S)
        s = s + mask_b
        s = s - jnp.max(s, axis=-1, keepdims=True)
        p = jnp.exp(s)
        p = p * pl.reciprocal(jnp.sum(p, axis=-1, keepdims=True), approx=True)
        ctx = jnp.dot(p.astype(jnp.bfloat16), vh,
                      preferred_element_type=jnp.float32)             # (tq, hd)
        ctx_scr[:, pl.ds(h * hd, hd)] = ctx.astype(jnp.bfloat16)

    # ---- single full-contraction output projection ----
    attn = jnp.dot(ctx_scr[...], wo_ref[...],
                   preferred_element_type=jnp.float32) + bo_ref[...]  # (tq, D)

    # residual + post-LN
    x1 = _layer_norm(x_q + attn, ln1g_ref[...], ln1b_ref[...], eps)

    # ---- feed-forward ----
    h1 = jnp.dot(x1.astype(jnp.bfloat16), w1_ref[...],
                 preferred_element_type=jnp.float32) + b1_ref[...]
    h1 = _gelu(h1)
    h2 = jnp.dot(h1.astype(jnp.bfloat16), w2_ref[...],
                 preferred_element_type=jnp.float32) + b2_ref[...]
    x2 = _layer_norm(x1 + h2, ln2g_ref[...], ln2b_ref[...], eps)

    o_ref[0] = x2


# ------------------------------- pallas wrappers ------------------------------

_HAS_BUFFERED = hasattr(pl, "Buffered")


def _const_spec(shape):
    """BlockSpec for a grid-invariant (weight/bias) operand on a 2-D grid.

    Single-buffered when pipeline_mode=pl.Buffered(1) is available -- the block
    index never changes, so the default double buffer is pure VMEM waste.
    """
    n = len(shape)
    idx = lambda b, q, _n=n: (0,) * _n
    if _HAS_BUFFERED:
        try:
            return pl.BlockSpec(shape, idx, pipeline_mode=pl.Buffered(1))
        except Exception:
            pass
    return pl.BlockSpec(shape, idx)


def _vmem_limit_bytes():
    # Generation-aware limit: physical VMEM minus headroom for compiler scratch
    # and pipeline buffers.  v7x (64 MiB) -> ~48 MiB, v6e/v5e (128 MiB) -> 112 MiB.
    try:
        cap = int(pltpu.get_tpu_info().vmem_capacity_bytes)
    except Exception:
        cap = 64 * 1024 * 1024
    return max(32 * 1024 * 1024, min(cap - 16 * 1024 * 1024, 112 * 1024 * 1024))


def bert_embeddings_pallas(word_gathered, pos_emb_slice, gamma, beta, eps):
    # TODO(synk): fuse this add+LayerNorm into the first encoder layer to avoid
    # one (B,S,D) f32 HBM round trip.
    B, S, D = word_gathered.shape
    pe = pos_emb_slice[None]          # (1, S, D)
    g = gamma[None]                   # (1, D)
    b = beta[None]
    return pl.pallas_call(
        functools.partial(_embed_kernel, eps),
        out_shape=jax.ShapeDtypeStruct((B, S, D), jnp.float32),
        grid=(B,),
        in_specs=[pl.BlockSpec((1, S, D), lambda i: (i, 0, 0)),
                  pl.BlockSpec((1, S, D), lambda i: (0, 0, 0)),
                  pl.BlockSpec((1, D), lambda i: (0, 0)),
                  pl.BlockSpec((1, D), lambda i: (0, 0))],
        out_specs=pl.BlockSpec((1, S, D), lambda i: (i, 0, 0)),
        compiler_params=pltpu.CompilerParams(dimension_semantics=("parallel",)),
    )(word_gathered, pe, g, b)


def bert_encoder_layer_pallas(x, kpm_add, lp, num_heads, eps, q_tile=None):
    B, S, D = x.shape
    H = num_heads
    assert D % H == 0
    hd = D // H
    F = lp["w1"].shape[0]             # feedforward dim
    scale = 1.0 / math.sqrt(hd)
    wdt = jnp.bfloat16                # weight dtype on the MXU

    # query-tile size: 256 fills the 256-tall v6e/v7x MXU, 128 for v5e / odd S
    if q_tile is None:
        if S % 256 == 0:
            q_tile = 256
        elif S % 128 == 0:
            q_tile = 128
        else:
            q_tile = S
    tq = min(q_tile, S)
    assert S % tq == 0, "query tile must divide S"

    in_w = lp["in_proj_w"]            # (3D, D), torch layout: qkv = x @ in_w.T + in_b
    in_b = lp["in_proj_b"]            # (3D,)

    # fused QKV weight (D, 3D); 1/sqrt(hd) folded into the Q columns / Q bias
    scale_vec = jnp.concatenate([jnp.full((D,), scale, jnp.float32),
                                 jnp.ones((2 * D,), jnp.float32)])
    wqkv = (in_w.T * scale_vec[None, :]).astype(wdt)        # (D, 3D)
    bqkv = (in_b * scale_vec)[None].astype(jnp.float32)     # (1, 3D)

    wo = lp["out_w"].T.astype(wdt)                          # (D, D)
    bo = lp["out_b"][None].astype(jnp.float32)              # (1, D)

    w1 = lp["w1"].T.astype(wdt)       # (D, F)
    b1 = lp["b1"][None]               # (1, F)
    w2 = lp["w2"].T.astype(wdt)       # (F, D)
    b2 = lp["b2"][None]               # (1, D)
    ln1g = lp["ln1_g"][None]
    ln1b = lp["ln1_b"][None]
    ln2g = lp["ln2_g"][None]
    ln2b = lp["ln2_b"][None]

    grid = (B, S // tq)

    return pl.pallas_call(
        functools.partial(_encoder_layer_kernel, H, eps),
        out_shape=jax.ShapeDtypeStruct((B, S, D), jnp.float32),
        grid=grid,
        in_specs=[pl.BlockSpec((1, S, D), lambda b, q: (b, 0, 0)),   # x (full seq)
                  pl.BlockSpec((1, 1, S), lambda b, q: (b, 0, 0)),   # additive mask
                  _const_spec((D, 3 * D)), _const_spec((1, 3 * D)),  # Wqkv, bqkv
                  _const_spec((D, D)), _const_spec((1, D)),          # Wo, bo
                  _const_spec((1, D)), _const_spec((1, D)),          # ln1
                  _const_spec((D, F)), _const_spec((1, F)),          # W1, b1
                  _const_spec((F, D)), _const_spec((1, D)),          # W2, b2
                  _const_spec((1, D)), _const_spec((1, D))],         # ln2
        out_specs=pl.BlockSpec((1, tq, D), lambda b, q: (b, q, 0)),
        scratch_shapes=[pltpu.VMEM((S, 3 * D), jnp.bfloat16),        # QKV cache
                        pltpu.VMEM((tq, D), jnp.bfloat16)],          # per-head ctx
        compiler_params=pltpu.CompilerParams(
            # q axis must be "arbitrary": QKV is computed at q==0 and reused.
            dimension_semantics=("parallel", "arbitrary"),
            vmem_limit_bytes=_vmem_limit_bytes()),
    )(x, kpm_add, wqkv, bqkv, wo, bo, ln1g, ln1b, w1, b1, w2, b2, ln2g, ln2b)


# ------------------------------ model (glue side) -----------------------------

def init_params(key, cfg):
    D = cfg["hidden_dim"]
    F = cfg["feedforward_dim"]
    V = cfg["vocab_size"]
    P = cfg["max_position_embeddings"]
    L = cfg["num_layers"]

    keys = jax.random.split(key, 2 + 5 * L)
    params = {
        "word_emb": 0.02 * jax.random.normal(keys[0], (V, D), jnp.float32),
        "pos_emb": 0.02 * jax.random.normal(keys[1], (P, D), jnp.float32),
        "emb_ln_g": jnp.ones((D,), jnp.float32),
        "emb_ln_b": jnp.zeros((D,), jnp.float32),
        "layers": [],
    }
    for l in range(L):
        k = keys[2 + 5 * l: 2 + 5 * (l + 1)]
        params["layers"].append({
            "in_proj_w": 0.02 * jax.random.normal(k[0], (3 * D, D), jnp.float32),
            "in_proj_b": jnp.zeros((3 * D,), jnp.float32),
            "out_w": 0.02 * jax.random.normal(k[1], (D, D), jnp.float32),
            "out_b": jnp.zeros((D,), jnp.float32),
            "ln1_g": jnp.ones((D,), jnp.float32),
            "ln1_b": jnp.zeros((D,), jnp.float32),
            "w1": 0.02 * jax.random.normal(k[2], (F, D), jnp.float32),
            "b1": jnp.zeros((F,), jnp.float32),
            "w2": 0.02 * jax.random.normal(k[3], (D, F), jnp.float32),
            "b2": jnp.zeros((D,), jnp.float32),
            "ln2_g": jnp.ones((D,), jnp.float32),
            "ln2_b": jnp.zeros((D,), jnp.float32),
        })
    return params


def bert_for_embedding(params, input_ids, attention_mask, cfg):
    B, S = input_ids.shape
    eps = cfg["layer_norm_eps"]

    # embedding gather is glue; add + layernorm happens in the Pallas kernel
    we = jnp.take(params["word_emb"], input_ids, axis=0)        # (B, S, D)
    pe = params["pos_emb"][:S]                                  # (S, D)
    x = bert_embeddings_pallas(we, pe, params["emb_ln_g"], params["emb_ln_b"], eps)

    # key_padding_mask: positions with attention_mask == 0 get a large finite
    # negative additive bias on the keys (avoids inf-inf NaN in the softmax).
    # NOTE: a fully-masked row yields a uniform attention distribution instead
    # of PyTorch's NaN -- documented semantic divergence.
    kpm_add = jnp.where(attention_mask == 0, MASK_NEG, 0.0).astype(jnp.float32)
    kpm_add = kpm_add[:, None, :]                               # (B, 1, S)

    # TODO(synk): cross-pallas_call weight prefetch (start layer l+1's weight DMA
    # during layer l compute, P10 pattern) -- biggest remaining lever on v5e.
    for lp in params["layers"]:
        x = bert_encoder_layer_pallas(x, kpm_add, lp, cfg["num_heads"], eps)
    return x


# ----------------------------------- main -------------------------------------

if __name__ == "__main__":
    # Small but lane-aligned demo config: D=256, head_dim=128, S=128 so every
    # block / per-head slice is a multiple of the (8,128) vreg tile (the tiny
    # D=32/S=8 config exercises nothing but masked partial stores).
    cfg = {
        "hidden_dim": 256,
        "feedforward_dim": 256 * 4,
        "num_layers": 2,
        "num_heads": 2,            # head_dim = 128
        "layer_norm_eps": 1e-12,
        "vocab_size": 1000,
        "max_position_embeddings": 512,
    }

    key = jax.random.PRNGKey(0)
    pkey, ikey = jax.random.split(key)
    params = init_params(pkey, cfg)

    B, S = 2, 128
    input_ids = jax.random.randint(ikey, (B, S), 0, cfg["vocab_size"], dtype=jnp.int32)
    attention_mask = jnp.ones((B, S), jnp.int32)
    attention_mask = attention_mask.at[1, -16:].set(0)   # pad the tail of batch row 1

    out = bert_for_embedding(params, input_ids, attention_mask, cfg)
    out = jax.block_until_ready(out)

    assert out.shape == (B, S, cfg["hidden_dim"])
    assert out.dtype == jnp.float32
    assert bool(jnp.all(jnp.isfinite(out)))
    print("KERNEL_OK")
</pallas_src>

<mosaic_0001>
module attributes {stable_mosaic.version = 11 : i64} {
  func.func @_embed_kernel(%arg0: i32, %arg1: memref<1x128x256xf32, #tpu.memory_space<vmem>>, %arg2: memref<1x128x256xf32, #tpu.memory_space<vmem>>, %arg3: memref<1x256xf32, #tpu.memory_space<vmem>>, %arg4: memref<1x256xf32, #tpu.memory_space<vmem>>, %arg5: memref<1x128x256xf32, #tpu.memory_space<vmem>>) attributes {dimension_semantics = [#tpu.dimension_semantics<parallel>], iteration_bounds = array<i64: 2>, scalar_prefetch = 0 : i64, scratch_operands = 0 : i64, tpu.core_type = #tpu.core_type<tc>, window_params = [{transform_indices = @transform_0, window_bounds = array<i64: 1, 128, 256>}, {pipeline_mode = #tpu.pipeline_mode<synchronous>, transform_indices = @transform_1, window_bounds = array<i64: 1, 128, 256>}, {pipeline_mode = #tpu.pipeline_mode<synchronous>, transform_indices = @transform_2, window_bounds = array<i64: 1, 256>}, {pipeline_mode = #tpu.pipeline_mode<synchronous>, transform_indices = @transform_3, window_bounds = array<i64: 1, 256>}, {transform_indices = @transform_4, window_bounds = array<i64: 1, 128, 256>}]} {
    %c0 = arith.constant 0 : index
    %c0_0 = arith.constant 0 : index
    %c0_1 = arith.constant 0 : index
    %0 = vector.load %arg1[%c0, %c0_0, %c0_1] : memref<1x128x256xf32, #tpu.memory_space<vmem>>, vector<1x128x256xf32>
    %1 = vector.shape_cast %0 : vector<1x128x256xf32> to vector<128x256xf32>
    %c0_2 = arith.constant 0 : index
    %c0_3 = arith.constant 0 : index
    %c0_4 = arith.constant 0 : index
    %2 = vector.load %arg2[%c0_2, %c0_3, %c0_4] : memref<1x128x256xf32, #tpu.memory_space<vmem>>, vector<1x128x256xf32>
    %3 = vector.shape_cast %2 : vector<1x128x256xf32> to vector<128x256xf32>
    %4 = arith.addf %1, %3 : vector<128x256xf32>
    %c0_5 = arith.constant 0 : index
    %c0_6 = arith.constant 0 : index
    %5 = vector.load %arg3[%c0_5, %c0_6] : memref<1x256xf32, #tpu.memory_space<vmem>>, vector<1x256xf32>
    %c0_7 = arith.constant 0 : index
    %c0_8 = arith.constant 0 : index
    %6 = vector.load %arg4[%c0_7, %c0_8] : memref<1x256xf32, #tpu.memory_space<vmem>>, vector<1x256xf32>
    %cst = arith.constant dense<0.000000e+00> : vector<128xf32>
    %7 = vector.multi_reduction <add>, %4, %cst [1] : vector<128x256xf32> to vector<128xf32>
    %8 = vector.shape_cast %7 : vector<128xf32> to vector<128x1xf32>
    %cst_9 = arith.constant 2.560000e+02 : f32
    %9 = vector.broadcast %cst_9 : f32 to vector<128x1xf32>
    %10 = arith.divf %8, %9 : vector<128x1xf32>
    %11 = vector.broadcast %10 : vector<128x1xf32> to vector<128x256xf32>
    %12 = arith.subf %4, %11 : vector<128x256xf32>
    %13 = arith.mulf %12, %12 : vector<128x256xf32>
    %cst_10 = arith.constant dense<0.000000e+00> : vector<128xf32>
    %14 = vector.multi_reduction <add>, %13, %cst_10 [1] : vector<128x256xf32> to vector<128xf32>
    %15 = vector.shape_cast %14 : vector<128xf32> to vector<128x1xf32>
    %cst_11 = arith.constant 2.560000e+02 : f32
    %16 = vector.broadcast %cst_11 : f32 to vector<128x1xf32>
    %17 = arith.divf %15, %16 : vector<128x1xf32>
    %18 = vector.broadcast %10 : vector<128x1xf32> to vector<128x256xf32>
    %19 = arith.subf %4, %18 : vector<128x256xf32>
    %cst_12 = arith.constant 9.99999996E-13 : f32
    %20 = vector.broadcast %cst_12 : f32 to vector<128x1xf32>
    %21 = arith.addf %17, %20 : vector<128x1xf32>
    %22 = math.rsqrt %21 : vector<128x1xf32>
    %23 = vector.broadcast %22 : vector<128x1xf32> to vector<128x256xf32>
    %24 = arith.mulf %19, %23 : vector<128x256xf32>
    %25 = vector.broadcast %5 : vector<1x256xf32> to vector<128x256xf32>
    %26 = arith.mulf %24, %25 : vector<128x256xf32>
    %27 = vector.broadcast %6 : vector<1x256xf32> to vector<128x256xf32>
    %28 = arith.addf %26, %27 : vector<128x256xf32>
    %c0_13 = arith.constant 0 : index
    %c0_14 = arith.constant 0 : index
    %c0_15 = arith.constant 0 : index
    %29 = vector.load %arg5[%c0_13, %c0_14, %c0_15] : memref<1x128x256xf32, #tpu.memory_space<vmem>>, vector<1x128x256xf32>
    %30 = vector.shape_cast %29 : vector<1x128x256xf32> to vector<128x256xf32>
    %31 = vector.shape_cast %28 : vector<128x256xf32> to vector<1x128x256xf32>
    tpu.vector_store %arg5[%c0_13, %c0_14, %c0_15], %31 {strides = array<i32>} : memref<1x128x256xf32, #tpu.memory_space<vmem>>, vector<1x128x256xf32>,
    return
  }
  func.func @transform_0(%arg0: i32) -> (i32, i32, i32) {
    %c0_i32 = arith.constant 0 : i32
    %c0_i32_0 = arith.constant 0 : i32
    %c0_i32_1 = arith.constant 0 : i32
    return %arg0, %c0_i32, %c0_i32_0 : i32, i32, i32
  }
  func.func @transform_1(%arg0: i32) -> (i32, i32, i32) {
    %c0_i32 = arith.constant 0 : i32
    %c0_i32_0 = arith.constant 0 : i32
    %c0_i32_1 = arith.constant 0 : i32
    %c0_i32_2 = arith.constant 0 : i32
    return %c0_i32, %c0_i32_0, %c0_i32_1 : i32, i32, i32
  }
  func.func @transform_2(%arg0: i32) -> (i32, i32) {
    %c0_i32 = arith.constant 0 : i32
    %c0_i32_0 = arith.constant 0 : i32
    %c0_i32_1 = arith.constant 0 : i32
    return %c0_i32, %c0_i32_0 : i32, i32
  }
  func.func @transform_3(%arg0: i32) -> (i32, i32) {
    %c0_i32 = arith.constant 0 : i32
    %c0_i32_0 = arith.constant 0 : i32
    %c0_i32_1 = arith.constant 0 : i32
    return %c0_i32, %c0_i32_0 : i32, i32
  }
  func.func @transform_4(%arg0: i32) -> (i32, i32, i32) {
    %c0_i32 = arith.constant 0 : i32
    %c0_i32_0 = arith.constant 0 : i32
    %c0_i32_1 = arith.constant 0 : i32
    return %arg0, %c0_i32, %c0_i32_0 : i32, i32, i32
  }
}

</mosaic_0001>

<bundles_post_ra>
// kernel: tpu_custom_call.1
= control target key start
LH: loop header
LB: loop body
LE: loop exit
PB: predicated region body
PF: predicated region fallthrough
CT: control target
= control target key end

     0   :  { %9 = vsyncpa [#allocation3], 0  ;;  %s1720_s0 = inlined_call_operand.hbm [shape: f32[2,128,256], index: 0, kind: input, shape index: {}]   ;;  %s1721_s1 = inlined_call_operand.hbm [shape: f32[1,128,256], index: 1, kind: input, shape index: {}]   ;;  %s1722_s2 = inlined_call_operand.vmem [shape: f32[1,256], index: 2, kind: input, shape index: {}]   ;;  %s1723_s3 = inlined_call_operand.vmem [shape: f32[1,256], index: 3, kind: input, shape index: {}]   ;;  %s1724_s4 = inlined_call_operand.hbm [shape: f32[2,128,256], index: 4, kind: output, shape index: {}]  }
   0x1   :  { %11 = vsyncpa [#allocation3 + $0x1], 0 }
   0x2   :  { %12 = vsyncpa [#allocation6], 0 }
   0x3   :  { %13 = vsyncpa [#allocation4], 0 }
   0x4   :  { %15 = vsyncpa [#allocation4 + $0x1], 0  ;;  %s1074_s15 = smov 0   ;;  %s1076_s16 = smov 0  }
   0x5   :  { %s1078_s17 = smov 0   ;;  %s1080_s18 = smov 0  }
   0x6 LB: > { %s1095_s19 = sadd.s32 4294967295, %s1040_s18   ;;  %s801_s20 = sadd.s32 4294967294, %s1040_s18   ;;  %s1040_s18 = sphi %s1080_s18, %s1744_s18   ;;  %s1036_s17 = sphi %s1078_s17, %s1743_s17   ;;  %s1032_s16 = sphi %s1076_s16, %s1742_s16   ;;  %s1028_s15 = sphi %s1074_s15, %s1741_s15  }
   0x7   : > { %p41_p0 = scmp.ne.s32.totalorder %s1032_s16, %s1028_s15  ;;  %p1725_p1 = scmp.eq.s32.totalorder %s1095_s19, 0 }
   0x8   : > { %p134_p3 = scmp.eq.s32.totalorder %s801_s20, 1  ;;  %p802_p5 = scmp.ge.s32.totalorder %s1040_s18, 1 }
   0x9   : > { %p1104_p4 = por %p1725_p1, %p41_p0  ;;  %p141_p7 = scmp.lt.s32.totalorder %s1040_s18, 3 }
   0xa   : > { %p1109_p6 = por %p134_p3, %p41_p0  ;;  %s1042_s24 = smov [#allocation5]  }
   0xb   : > { %s1728_s21 = scalar_select %p1104_p4, 1, 0 }
   0xc   : > { %s1729_s22 = scalar_select %p1109_p6, 1, 0 }
   0xd   : > { %p1114_p8 = pnand %p802_p5, %p141_p7  ;;  %s153_s25 = sshll.u32 %s1042_s24, 4  ;;  %s1118_s25 = int_to_ptr.vmem [resolvable:$true] %s153_s25 }
   0xe   : > { %s1130_s27 = sadd.s32 1, %s1040_s18   ;;  %s28_s28 = sadd.s32 1, %s1036_s17 }
   0xf   : > { %s1730_s23 = scalar_select %p1114_p8, 1, 0 }
  0x10   : > { %p827_p9 = pneg %p1114_p8  ;;  %s25_s29 = ssub.s32 %s1040_s18, %s1130_s27 }
  0x11   : > { %s912_s6 = scalar_lea.hbm %s1721_s1, 4096 }
  0x12   : > { %p1125_p11 = pnand %p827_p9, %p1725_p1  ;;  %p913_p12 = scmp.ne.s32.totalorder %s1721_s1, %s912_s6 }
  0x13   : > { %p919_p5 = scmp.lt.u32.totalorder %s912_s6, %s1721_s1 }
  0x14   : > { %p914_p13 = pneg %p1125_p11 }
  0x16   : > { %p915_p0 = pnand %p914_p13, %p913_p12 }
  0x18   : > { %p916_p3 = pneg %p915_p0 }
  0x1a   : > { %p921_p7 = pnand %p919_p5, %p916_p3 }
  0x1c   : > { %924 = shalt.err (!%p921_p7)
}
  0x1d   : > { %s925_s11 = scalar_lea.vmem %s1118_s25, 4096  ;;  %p933_p2 = scmp.lt.s32.totalorder %s1118_s25, %s1118_s25 }
  0x1e   : > { %p926_p9 = scmp.ne.s32.totalorder %s1118_s25, %s925_s11  ;;  %p934_p6 = scmp.lt.s32.totalorder %s925_s11, %s925_s11 }
  0x20   : > { %p928_p10 = pnand %p926_p9, %p914_p13  ;;  %p935_p4 = por %p934_p6, %p933_p2 }
  0x22   : > { %p929_p1 = pneg %p928_p10 }
  0x24   : > { %p936_p8 = pnand %p935_p4, %p929_p1 }
  0x26   : > { %939 = shalt.err (!%p936_p8)
}
  0x27   : > { %s1043_s12 = smov 256   ;;  %s1044_s13 = smov 16  }
  0x28   : > { %830 = dma.hbm_to_vmem [thread:$0]  (!%p1125_p11), %s1721_s1, 4096, %s1118_s25, [#allocation6], %s1043_s12, %s1043_s12, %s1044_s13  }
  0x29   : > { %p26_p1 = scmp.eq.s32.totalorder %s25_s29, 0  ;;  %p35_p2 = scmp.ne.s32.totalorder %s1036_s17, %s1032_s16 }
  0x2a   : > { %p36_p4 = scmp.eq.s32.totalorder %s1040_s18, 0  ;;  %p840_p6 = scmp.lt.s32.totalorder %s1040_s18, 2 }
  0x2b   : > { %s1164_s24 = scalar_select %p26_p1, %s1036_s17, %s28_s28  }
  0x2c   : > { %p37_p8 = por %p36_p4, %p35_p2  ;;  %p1732_p10 = scmp.eq.s32.totalorder %s1095_s19, 1 }
  0x2d   : > { %s173_s26 = sand.u32 1, %s1036_s17   ;;  %s817_s5 = sshll.u32 %s1040_s18, 12 }
  0x2e   : > { %p1168_p12 = por %p1732_p10, %p35_p2  ;;  %s805_s6 = sshll.u32 %s173_s26, 8 }
  0x2f   : > { %s1177_s9 = scalar_lea.hbm %s1720_s0, %s817_s5  ;;  %s177_s25 = scalar_lea.vmem [#allocation2], %s805_s6 }
  0x30   : > { %s184_s28 = sshll.u32 %s177_s25, 4  ;;  %p1179_p11 = pnand %p840_p6, %p37_p8  ;;  %s1183_s28 = int_to_ptr.vmem [resolvable:$true] %s184_s28 }
  0x31   : > { %s1185_s10 = scalar_lea.sflag [#allocation3], %s173_s26  ;;  %s940_s11 = scalar_lea.hbm %s1177_s9, 4096 }
  0x32   : > { %p941_p13 = scmp.ne.s32.totalorder %s1177_s9, %s940_s11  ;;  %p942_p0 = pneg %p1179_p11 }
  0x33   : > { %s945_s5 = scalar_lea.hbm %s1720_s0, 8192  ;;  %p946_p7 = scmp.lt.u32.totalorder %s1177_s9, %s1720_s0 }
  0x34   : > { %p943_p3 = pnand %p942_p0, %p941_p13  ;;  %p947_p9 = scmp.lt.u32.totalorder %s945_s5, %s940_s11 }
  0x35   : > { %p949_p2 = scmp.lt.u32.totalorder %s940_s11, %s1177_s9 }
  0x36   : > { %p944_p5 = pneg %p943_p3  ;;  %p948_p1 = por %p947_p9, %p946_p7 }
  0x38   : > { %p950_p4 = por %p949_p2, %p948_p1 }
  0x3a   : > { %p951_p6 = pnand %p950_p4, %p944_p5 }
  0x3c   : > { %954 = shalt.err (!%p951_p6)
}
  0x3d   : > { %s955_s26 = scalar_lea.vmem %s1183_s28, 4096  ;;  %s1045_s8 = smov [#allocation2]  }
  0x3e   : > { %p956_p8 = scmp.ne.s32.totalorder %s1183_s28, %s955_s26  ;;  %s960_s25 = sshll.u32 %s1045_s8, 4  ;;  %s961_s25 = int_to_ptr.vmem [resolvable:$false] %s960_s25 }
  0x3f   : > { %s962_s14 = scalar_lea.vmem %s961_s25, 8192  ;;  %p963_p3 = scmp.lt.s32.totalorder %s1183_s28, %s961_s25 }
  0x40   : > { %p958_p10 = pnand %p956_p8, %p942_p0  ;;  %p964_p7 = scmp.lt.s32.totalorder %s962_s14, %s955_s26 }
  0x42   : > { %p959_p13 = pneg %p958_p10  ;;  %p965_p9 = por %p964_p7, %p963_p3 }
  0x44   : > { %p966_p1 = pnand %p965_p9, %p959_p13 }
  0x46   : > { %969 = shalt.err (!%p966_p1)
}
  0x47   : > { %834 = dma.hbm_to_vmem [thread:$0]  (!%p1179_p11), %s1177_s9, 4096, %s1183_s28, %s1185_s10, %s1043_s12, %s1043_s12, %s1044_s13  }
  0x48   : > { %p1735_p0 = scmp.ne.s32.totalorder %s1730_s23, 0 }
  0x49   : > { %s1219_s11 = sand.u32 (!%p1735_p0), 1, %s1032_s16   ;;  %p1736_p5 = scmp.ne.s32.totalorder (!%p1735_p0), %s1728_s21, 0 }
  0x4a   : > { %196 = sbr.rel (%p1735_p0) target bundleno = 457 (0x1c9), region = 36  ;;  %s809_s20 = sshll.u32 (!%p1735_p0), %s1219_s11, 8 }
  0x4b   : > { %s199_s5 = scalar_lea.sflag (!%p1735_p0), [#allocation3], %s1219_s11  ;;  %s1225_s29 = scalar_lea.vmem (!%p1735_p0), [#allocation2], %s809_s20 }
  0x51   : > { %1015 = dma.done.wait (%p1736_p5), %s199_s5, 4096  }
  0x52   : > { %1017 = vsyncadd (%p1736_p5), %s199_s5, 4294963200  ;;  %p1737_p11 = scmp.eq.s32.totalorder %s1095_s19, 0 }
  0x54   : > { %1019 = dma.done.wait (%p1737_p11), [#allocation6], 4096   ;;  %p1738_p2 = pmov %p1737_p11 }
  0x55   : > { %v231_v0 = vld [vmem:[%s1225_s29] sm:$0xff]  ;;  %v232_v1 = vld [vmem:[%s1225_s29 + $0x8] sm:$0xff]  ;;  %v233_v10 = vld [vmem:[%s1225_s29 + $0x10] sm:$0xff]  ;;  %s1549_s9 = scalar_lea.vmem [#allocation7], %s809_s20  ;;  %s818_s28 = sshll.u32 %s1095_s19, 12 }
  0x56   : > { %1021 = vsyncadd (%p1738_p2), [#allocation6], 4294963200  ;;  %v263_v2 = vld [vmem:[#allocation5] sm:$0xff]  ;;  %v264_v3 = vld [vmem:[#allocation5 + $0x8] sm:$0xff]  ;;  %s718_s10 = sshll.u32 %s1549_s9, 4  ;;  %s1668_s26 = scalar_lea.hbm %s1724_s4, %s818_s28  ;;  %s1670_s10 = int_to_ptr.vmem [resolvable:$true] %s718_s10 }
  0x57   : > { %v1237_v4 = vadd.f32 %v263_v2, %v231_v0  ;;  %v235_v5 = vld [vmem:[%s1225_s29 + $0x20] sm:$0xff]  ;;  %v236_v6 = vld [vmem:[%s1225_s29 + $0x28] sm:$0xff]  ;;  %v1241_v7 = vadd.f32 %v264_v3, %v232_v1  ;;  %v234_v13 = vld [vmem:[%s1225_s29 + $0x18] sm:$0xff]  ;;  %s705_s19 = scalar_lea.sflag [#allocation4], %s1219_s11  ;;  %s970_s8 = scalar_lea.vmem %s1670_s10, 4096 }
  0x58   : > { %v267_v8 = vld [vmem:[#allocation5 + $0x20] sm:$0xff]  ;;  %v268_v9 = vld [vmem:[#allocation5 + $0x28] sm:$0xff]  ;;  %v265_v14 = vld [vmem:[#allocation5 + $0x10] sm:$0xff]  ;;  %p971_p4 = scmp.ne.s32.totalorder %s1670_s10, %s970_s8  ;;  %s1046_s25 = smov [#allocation7]  }
  0x59   : > { %v1244_v11 = vadd.f32 %v267_v8, %v235_v5  ;;  %v1246_v12 = vadd.f32 %v268_v9, %v236_v6  ;;  %v266_v15 = vld [vmem:[#allocation5 + $0x18] sm:$0xff]  ;;  %v329_v16 = vadd.f32 %v1241_v7, %v1237_v4  ;;  %v1251_v17 = vadd.f32 %v265_v14, %v233_v10  ;;  %v237_v19 = vld [vmem:[%s1225_s29 + $0x30] sm:$0xff]  ;;  %v239_v25 = vld [vmem:[%s1225_s29 + $0x40] sm:$0xff]  ;;  %s974_s14 = sshll.u32 %s1046_s25, 4  ;;  %s975_s14 = int_to_ptr.vmem [resolvable:$false] %s974_s14 }
  0x5a   : > { %v1253_v18 = vadd.f32 %v266_v15, %v234_v13  ;;  %v238_v20 = vld [vmem:[%s1225_s29 + $0x38] sm:$0xff]  ;;  %v269_v21 = vld [vmem:[#allocation5 + $0x30] sm:$0xff]  ;;  %v240_v26 = vld [vmem:[%s1225_s29 + $0x48] sm:$0xff]  ;;  %p972_p6 = pnand %p971_p4, %p1168_p12  ;;  %s976_s20 = scalar_lea.vmem %s975_s14, 8192 }
  0x5b   : > { %v335_v22 = vadd.f32 %v1246_v12, %v1244_v11  ;;  %v270_v23 = vld [vmem:[#allocation5 + $0x38] sm:$0xff]  ;;  %v1259_v24 = vadd.f32 %v269_v21, %v237_v19  ;;  %330 = vadd.xlane.f32.xlu0 %v329_v16  ;;  %v271_v29 = vld [vmem:[#allocation5 + $0x40] sm:$0xff]  ;;  %v272_v30 = vld [vmem:[#allocation5 + $0x48] sm:$0xff]  ;;  %p977_p10 = scmp.lt.s32.totalorder %s1670_s10, %s975_s14  ;;  %p978_p13 = scmp.lt.s32.totalorder %s976_s20, %s970_s8 }
  0x5c   : > { %v332_v27 = vadd.f32 %v1253_v18, %v1251_v17  ;;  %v1265_v28 = vadd.f32 %v270_v23, %v238_v20  ;;  %v241_v31 = vld [vmem:[%s1225_s29 + $0x50] sm:$0xff]  ;;  %v1268_v32 = vadd.f32 %v271_v29, %v239_v25  ;;  %v1270_v33 = vadd.f32 %v272_v30, %v240_v26  ;;  %v242_v34 = vld [vmem:[%s1225_s29 + $0x58] sm:$0xff]  ;;  %v243_v40 = vld [vmem:[%s1225_s29 + $0x60] sm:$0xff]  ;;  %p973_p8 = pneg %p972_p6 }
  0x5d   : > { %336 = vadd.xlane.f32.xlu1 %v335_v22  ;;  %v273_v35 = vld [vmem:[#allocation5 + $0x50] sm:$0xff]  ;;  %v274_v36 = vld [vmem:[#allocation5 + $0x58] sm:$0xff]  ;;  %v244_v41 = vld [vmem:[%s1225_s29 + $0x68] sm:$0xff]  ;;  %p979_p3 = por %p978_p13, %p977_p10 }
  0x5e   : > { %v338_v37 = vadd.f32 %v1265_v28, %v1259_v24  ;;  %v1275_v38 = vadd.f32 %v273_v35, %v241_v31  ;;  %v1277_v39 = vadd.f32 %v274_v36, %v242_v34  ;;  %v275_v42 = vld [vmem:[#allocation5 + $0x60] sm:$0xff]  ;;  %v276_v43 = vld [vmem:[#allocation5 + $0x68] sm:$0xff]  ;;  %v245_v44 = vld [vmem:[%s1225_s29 + $0x70] sm:$0xff]  ;;  %v341_v46 = vadd.f32 %v1270_v33, %v1268_v32 }
  0x5f   : > { %v246_v45 = vld [vmem:[%s1225_s29 + $0x78] sm:$0xff]  ;;  %333 = vadd.xlane.f32.xlu0 %v332_v27  ;;  %v1285_v47 = vadd.f32 %v275_v42, %v243_v40  ;;  %v1287_v48 = vadd.f32 %v276_v43, %v244_v41  ;;  %v277_v49 = vld [vmem:[#allocation5 + $0x70] sm:$0xff]  ;;  %v247_v51 = vld [vmem:[%s1225_s29 + $0x80] sm:$0xff]  ;;  %p980_p7 = pnand %p979_p3, %p973_p8 }
  0x60   : > { %v278_v50 = vld [vmem:[#allocation5 + $0x78] sm:$0xff]  ;;  %v344_v52 = vadd.f32 %v1277_v39, %v1275_v38  ;;  %v1292_v53 = vadd.f32 %v277_v49, %v245_v44  ;;  %v248_v55 = vld [vmem:[%s1225_s29 + $0x88] sm:$0xff]  ;;  %v279_v56 = vld [vmem:[#allocation5 + $0x80] sm:$0xff] }
  0x61   : > { %339 = vadd.xlane.f32.xlu1 %v338_v37  ;;  %v1294_v54 = vadd.f32 %v278_v50, %v246_v45  ;;  %v280_v57 = vld [vmem:[#allocation5 + $0x88] sm:$0xff]  ;;  %v249_v58 = vld [vmem:[%s1225_s29 + $0x90] sm:$0xff]  ;;  %v250_v59 = vld [vmem:[%s1225_s29 + $0x98] sm:$0xff]  ;;  %v347_v62 = vadd.f32 %v1287_v48, %v1285_v47  ;;  %v1301_v63 = vadd.f32 %v279_v56, %v247_v51 }
  0x62   : > { %v281_v60 = vld [vmem:[#allocation5 + $0x90] sm:$0xff]  ;;  %v282_v61 = vld [vmem:[#allocation5 + $0x98] sm:$0xff]  ;;  %v1303_v0 = vadd.f32 %v280_v57, %v248_v55  ;;  %v251_v1 = vld [vmem:[%s1225_s29 + $0xa0] sm:$0xff] }
  0x63   : > { %342 = vadd.xlane.f32.xlu0 %v341_v46  ;;  %v252_v2 = vld [vmem:[%s1225_s29 + $0xa8] sm:$0xff]  ;;  %v350_v3 = vadd.f32 %v1294_v54, %v1292_v53  ;;  %v1309_v5 = vadd.f32 %v281_v60, %v249_v58  ;;  %v1311_v6 = vadd.f32 %v282_v61, %v250_v59  ;;  %v283_v8 = vld [vmem:[#allocation5 + $0xa0] sm:$0xff]  ;;  %v253_v10 = vld [vmem:[%s1225_s29 + $0xb0] sm:$0xff] }
  0x64   : > { %v284_v9 = vld [vmem:[#allocation5 + $0xa8] sm:$0xff]  ;;  %v254_v13 = vld [vmem:[%s1225_s29 + $0xb8] sm:$0xff]  ;;  %v285_v14 = vld [vmem:[#allocation5 + $0xb0] sm:$0xff]  ;;  %v353_v16 = vadd.f32 %v1303_v0, %v1301_v63  ;;  %v1317_v19 = vadd.f32 %v283_v8, %v251_v1 }
  0x65   : > { %345 = vadd.xlane.f32.xlu1 %v344_v52  ;;  %v286_v15 = vld [vmem:[#allocation5 + $0xb8] sm:$0xff]  ;;  %v1319_v20 = vadd.f32 %v284_v9, %v252_v2  ;;  %v255_v21 = vld [vmem:[%s1225_s29 + $0xc0] sm:$0xff]  ;;  %v256_v22 = vld [vmem:[%s1225_s29 + $0xc8] sm:$0xff]  ;;  %v356_v23 = vadd.f32 %v1311_v6, %v1309_v5  ;;  %v1325_v25 = vadd.f32 %v285_v14, %v253_v10 }
  0x66   : > { %v1327_v26 = vadd.f32 %v286_v15, %v254_v13  ;;  %v287_v27 = vld [vmem:[#allocation5 + $0xc0] sm:$0xff]  ;;  %v288_v29 = vld [vmem:[#allocation5 + $0xc8] sm:$0xff]  ;;  %v257_v30 = vld [vmem:[%s1225_s29 + $0xd0] sm:$0xff] }
  0x67   : > { %348 = vadd.xlane.f32.xlu0 %v347_v62  ;;  %v258_v31 = vld [vmem:[%s1225_s29 + $0xd8] sm:$0xff]  ;;  %v289_v34 = vld [vmem:[#allocation5 + $0xd0] sm:$0xff]  ;;  %v359_v36 = vadd.f32 %v1319_v20, %v1317_v19  ;;  %v1333_v37 = vadd.f32 %v287_v27, %v255_v21  ;;  %v1335_v40 = vadd.f32 %v288_v29, %v256_v22  ;;  %v259_v41 = vld [vmem:[%s1225_s29 + $0xe0] sm:$0xff] }
  0x68   : > { %v290_v35 = vld [vmem:[#allocation5 + $0xd8] sm:$0xff]  ;;  %v260_v42 = vld [vmem:[%s1225_s29 + $0xe8] sm:$0xff]  ;;  %v362_v43 = vadd.f32 %v1327_v26, %v1325_v25  ;;  %v1341_v44 = vadd.f32 %v289_v34, %v257_v30  ;;  %v291_v46 = vld [vmem:[#allocation5 + $0xe0] sm:$0xff] }
  0x69   : > { %351 = vadd.xlane.f32.xlu1 %v350_v3  ;;  %v1343_v45 = vadd.f32 %v290_v35, %v258_v31  ;;  %v292_v49 = vld [vmem:[#allocation5 + $0xe8] sm:$0xff]  ;;  %v261_v50 = vld [vmem:[%s1225_s29 + $0xf0] sm:$0xff]  ;;  %v262_v51 = vld [vmem:[%s1225_s29 + $0xf8] sm:$0xff]  ;;  %v365_v56 = vadd.f32 %v1335_v40, %v1333_v37  ;;  %v1349_v57 = vadd.f32 %v291_v46, %v259_v41 }
  0x6a   : > { %v293_v52 = vld [vmem:[#allocation5 + $0xf0] sm:$0xff]  ;;  %v294_v55 = vld [vmem:[#allocation5 + $0xf8] sm:$0xff]  ;;  %v1351_v58 = vadd.f32 %v292_v49, %v260_v42 }
  0x6b   : > { %354 = vadd.xlane.f32.xlu0 %v353_v16  ;;  %v368_v59 = vadd.f32 %v1343_v45, %v1341_v44  ;;  %v1355_v60 = vadd.f32 %v293_v52, %v261_v50  ;;  %v1357_v61 = vadd.f32 %v294_v55, %v262_v51 }
  0x6c   : > { %v371_v62 = vadd.f32 %v1351_v58, %v1349_v57 }
  0x6d   : > { %357 = vadd.xlane.f32.xlu1 %v356_v23  ;;  %v374_v1 = vadd.f32 %v1357_v61, %v1355_v60 }
  0x6f   : > { %360 = vadd.xlane.f32.xlu0 %v359_v36 }
  0x71   : > { %363 = vadd.xlane.f32.xlu1 %v362_v43 }
  0x73   : > { %366 = vadd.xlane.f32.xlu0 %v365_v56 }
  0x75   : > { %369 = vadd.xlane.f32.xlu1 %v368_v59 }
  0x77   : > { %372 = vadd.xlane.f32.xlu0 %v371_v62 }
  0x79   : > { %375 = vadd.xlane.f32.xlu1 %v374_v1 }
  0xe8   : > { %v331_v2 = vpop.xlane.xlu0 %330 }
  0xe9   : > { %v378_v3 = vmul.f32 0.00390625, %v331_v2 }
  0xea   : > { %v337_v8 = vpop.xlane.xlu1 %336 }
  0xeb   : > { %v380_v9 = vmul.f32 0.00390625, %v337_v8  ;;  %v1364_v10 = vsub.f32 %v1237_v4, %v378_v3  ;;  %v1367_v13 = vsub.f32 %v1241_v7, %v378_v3 }
  0xec   : > { %v334_v16 = vpop.xlane.xlu0 %333 }
  0xed   : > { %v1370_v14 = vsub.f32 %v1244_v11, %v380_v9  ;;  %v1373_v15 = vsub.f32 %v1246_v12, %v380_v9  ;;  %v379_v21 = vmul.f32 0.00390625, %v334_v16  ;;  %v426_v23 = vmul.f32 %v1364_v10, %v1364_v10 }
  0xee   : > { %v340_v22 = vpop.xlane.xlu1 %339  ;;  %v427_v27 = vmul.f32 %v1367_v13, %v1367_v13 }
  0xef   : > { %v381_v4 = vmul.f32 0.00390625, %v340_v22  ;;  %v430_v7 = vmul.f32 %v1370_v14, %v1370_v14  ;;  %v431_v11 = vmul.f32 %v1373_v15, %v1373_v15  ;;  %v1384_v29 = vsub.f32 %v1251_v17, %v379_v21 }
  0xf0   : > { %v1387_v12 = vsub.f32 %v1253_v18, %v379_v21  ;;  %v458_v30 = vadd.f32 %v427_v27, %v426_v23  ;;  %v343_v35 = vpop.xlane.xlu0 %342 }
  0xf1   : > { %v1390_v31 = vsub.f32 %v1259_v24, %v381_v4  ;;  %v1393_v34 = vsub.f32 %v1265_v28, %v381_v4  ;;  %v382_v36 = vmul.f32 0.00390625, %v343_v35  ;;  %v464_v42 = vadd.f32 %v431_v11, %v430_v7 }
  0xf2   : > { %459 = vadd.xlane.f32.xlu0 %v458_v30  ;;  %v346_v41 = vpop.xlane.xlu1 %345  ;;  %v428_v43 = vmul.f32 %v1384_v29, %v1384_v29  ;;  %v429_v17 = vmul.f32 %v1387_v12, %v1387_v12 }
  0xf3   : > { %v383_v18 = vmul.f32 0.00390625, %v346_v41  ;;  %v432_v46 = vmul.f32 %v1390_v31, %v1390_v31  ;;  %v433_v24 = vmul.f32 %v1393_v34, %v1393_v34  ;;  %v1404_v28 = vsub.f32 %v1268_v32, %v382_v36 }
  0xf4   : > { %v1407_v49 = vsub.f32 %v1270_v33, %v382_v36  ;;  %v461_v50 = vadd.f32 %v429_v17, %v428_v43  ;;  %v349_v55 = vpop.xlane.xlu0 %348 }
  0xf5   : > { %v1410_v51 = vsub.f32 %v1275_v38, %v383_v18  ;;  %v1413_v52 = vsub.f32 %v1277_v39, %v383_v18  ;;  %v384_v56 = vmul.f32 0.00390625, %v349_v55  ;;  %v467_v62 = vadd.f32 %v433_v24, %v432_v46 }
  0xf6   : > { %465 = vadd.xlane.f32.xlu0 %v464_v42  ;;  %462 = vadd.xlane.f32.xlu1 %v461_v50  ;;  %v352_v59 = vpop.xlane.xlu1 %351  ;;  %v434_v32 = vmul.f32 %v1404_v28, %v1404_v28  ;;  %v435_v33 = vmul.f32 %v1407_v49, %v1407_v49 }
  0xf7   : > { %v385_v1 = vmul.f32 0.00390625, %v352_v59  ;;  %v436_v38 = vmul.f32 %v1410_v51, %v1410_v51  ;;  %v437_v39 = vmul.f32 %v1413_v52, %v1413_v52  ;;  %v1424_v2 = vsub.f32 %v1285_v47, %v384_v56 }
  0xf8   : > { %v1427_v3 = vsub.f32 %v1287_v48, %v384_v56  ;;  %v470_v8 = vadd.f32 %v435_v33, %v434_v32  ;;  %v355_v21 = vpop.xlane.xlu0 %354 }
  0xf9   : > { %v1430_v9 = vsub.f32 %v1292_v53, %v385_v1  ;;  %v1433_v16 = vsub.f32 %v1294_v54, %v385_v1  ;;  %v386_v22 = vmul.f32 0.00390625, %v355_v21  ;;  %v473_v27 = vadd.f32 %v437_v39, %v436_v38 }
  0xfa   : > { %468 = vadd.xlane.f32.xlu1 %v467_v62  ;;  %471 = vadd.xlane.f32.xlu0 %v470_v8  ;;  %v358_v23 = vpop.xlane.xlu1 %357  ;;  %v438_v47 = vmul.f32 %v1424_v2, %v1424_v2  ;;  %v439_v48 = vmul.f32 %v1427_v3, %v1427_v3 }
  0xfb   : > { %v387_v4 = vmul.f32 0.00390625, %v358_v23  ;;  %v440_v53 = vmul.f32 %v1430_v9, %v1430_v9  ;;  %v441_v54 = vmul.f32 %v1433_v16, %v1433_v16  ;;  %v1444_v7 = vsub.f32 %v1301_v63, %v386_v22 }
  0xfc   : > { %v1447_v11 = vsub.f32 %v1303_v0, %v386_v22  ;;  %v476_v30 = vadd.f32 %v439_v48, %v438_v47  ;;  %v361_v41 = vpop.xlane.xlu0 %360 }
  0xfd   : > { %v1450_v35 = vsub.f32 %v1309_v5, %v387_v4  ;;  %v1453_v36 = vsub.f32 %v1311_v6, %v387_v4  ;;  %v388_v42 = vmul.f32 0.00390625, %v361_v41  ;;  %v479_v17 = vadd.f32 %v441_v54, %v440_v53 }
  0xfe   : > { %474 = vadd.xlane.f32.xlu1 %v473_v27  ;;  %477 = vadd.xlane.f32.xlu0 %v476_v30  ;;  %v364_v43 = vpop.xlane.xlu1 %363  ;;  %v442_v63 = vmul.f32 %v1444_v7, %v1444_v7  ;;  %v443_v0 = vmul.f32 %v1447_v11, %v1447_v11 }
  0xff   : > { %v389_v18 = vmul.f32 0.00390625, %v364_v43  ;;  %v444_v5 = vmul.f32 %v1450_v35, %v1450_v35  ;;  %v445_v6 = vmul.f32 %v1453_v36, %v1453_v36  ;;  %v1464_v46 = vsub.f32 %v1317_v19, %v388_v42 }
 0x100   : > { %v1467_v24 = vsub.f32 %v1319_v20, %v388_v42  ;;  %v482_v50 = vadd.f32 %v443_v0, %v442_v63  ;;  %v367_v59 = vpop.xlane.xlu0 %366 }
 0x101   : > { %v1470_v55 = vsub.f32 %v1325_v25, %v389_v18  ;;  %v1473_v56 = vsub.f32 %v1327_v26, %v389_v18  ;;  %v390_v62 = vmul.f32 0.00390625, %v367_v59  ;;  %v485_v33 = vadd.f32 %v445_v6, %v444_v5 }
 0x102   : > { %480 = vadd.xlane.f32.xlu1 %v479_v17  ;;  %483 = vadd.xlane.f32.xlu0 %v482_v50  ;;  %v370_v32 = vpop.xlane.xlu1 %369  ;;  %v446_v19 = vmul.f32 %v1464_v46, %v1464_v46  ;;  %v447_v20 = vmul.f32 %v1467_v24, %v1467_v24  ;;  %v587_v5 = vlaneseq }
 0x103   : > { %v391_v1 = vmul.f32 0.00390625, %v370_v32  ;;  %v448_v25 = vmul.f32 %v1470_v55, %v1470_v55  ;;  %v449_v26 = vmul.f32 %v1473_v56, %v1473_v56  ;;  %v1484_v38 = vsub.f32 %v1333_v37, %v390_v62 }
 0x104   : > { %v1487_v39 = vsub.f32 %v1335_v40, %v390_v62  ;;  %v488_v8 = vadd.f32 %v447_v20, %v446_v19  ;;  %v373_v23 = vpop.xlane.xlu0 %372 }
 0x105   : > { %v1490_v21 = vsub.f32 %v1341_v44, %v391_v1  ;;  %v1493_v22 = vsub.f32 %v1343_v45, %v391_v1  ;;  %v392_v27 = vmul.f32 0.00390625, %v373_v23  ;;  %v491_v48 = vadd.f32 %v449_v26, %v448_v25 }
 0x106   : > { %486 = vadd.xlane.f32.xlu1 %v485_v33  ;;  %489 = vadd.xlane.f32.xlu0 %v488_v8  ;;  %v376_v47 = vpop.xlane.xlu1 %375  ;;  %v450_v37 = vmul.f32 %v1484_v38, %v1484_v38  ;;  %v451_v40 = vmul.f32 %v1487_v39, %v1487_v39  ;;  %v588_v33 = vshrl.u32 %v587_v5, 7 }
 0x107   : > { %v393_v4 = vmul.f32 0.00390625, %v376_v47  ;;  %v452_v44 = vmul.f32 %v1490_v21, %v1490_v21  ;;  %v453_v45 = vmul.f32 %v1493_v22, %v1493_v22  ;;  %v1504_v53 = vsub.f32 %v1349_v57, %v392_v27  ;;  %v327_v47 = vld [vmem:[%s1722_s2] sm:$0x3] }
 0x108   : > { %v1507_v54 = vsub.f32 %v1351_v58, %v392_v27  ;;  %v494_v30 = vadd.f32 %v451_v40, %v450_v37  ;;  %v589_v23 = vsub.s32 0, %v588_v33  ;;  %v593_v27 = vsub.s32 1, %v588_v33 }
 0x109   : > { %v1510_v41 = vsub.f32 %v1355_v60, %v393_v4  ;;  %v1513_v42 = vsub.f32 %v1357_v61, %v393_v4  ;;  %v497_v43 = vadd.f32 %v453_v45, %v452_v44  ;;  %v454_v17 = vmul.f32 %v1504_v53, %v1504_v53  ;;  %v328_v44 = vld [vmem:[%s1723_s3] sm:$0x3] }
 0x10a   : > { %492 = vadd.xlane.f32.xlu1 %v491_v48  ;;  %495 = vadd.xlane.f32.xlu0 %v494_v30  ;;  %v455_v57 = vmul.f32 %v1507_v54, %v1507_v54 }
 0x10b   : > { %v456_v58 = vmul.f32 %v1510_v41, %v1510_v41  ;;  %v457_v63 = vmul.f32 %v1513_v42, %v1513_v42 }
 0x10c   : > { %v500_v60 = vadd.f32 %v455_v57, %v454_v17  ;;  %v1531_v17 = vrot.slane %v327_v47, %v593_v27 }
 0x10d   : > { %v503_v61 = vadd.f32 %v457_v63, %v456_v58 }
 0x10e   : > { %498 = vadd.xlane.f32.xlu1 %v497_v43  ;;  %501 = vadd.xlane.f32.xlu0 %v500_v60  ;;  %v1529_v43 = vrot.slane %v327_v47, %v589_v23  ;;  %v1533_v60 = vrot.slane %v328_v44, %v589_v23 }
 0x112   : > { %504 = vadd.xlane.f32.xlu1 %v503_v61  ;;  %v1535_v61 = vrot.slane %v328_v44, %v593_v27 }
 0x17f   : > { %v460_v0 = vpop.xlane.xlu0 %459 }
 0x180   : > { %v506_v18 = vmul.f32 0.00390625, %v460_v0 }
 0x182   : > { %v522_v6 = vadd.f32 1e-12, %v506_v18 }
 0x183   : > { %v463_v50 = vpop.xlane.xlu1 %462  ;;  %v466_v59 = vpop.xlane.xlu0 %465 }
 0x184   : > { %880 = vrsqrt.f32 %v522_v6  ;;  %v507_v62 = vmul.f32 0.00390625, %v463_v50  ;;  %v508_v32 = vmul.f32 0.00390625, %v466_v59 }
 0x186   : > { %v523_v19 = vadd.f32 1e-12, %v507_v62  ;;  %v524_v20 = vadd.f32 1e-12, %v508_v32 }
 0x187   : > { %v469_v1 = vpop.xlane.xlu1 %468  ;;  %v472_v25 = vpop.xlane.xlu0 %471 }
 0x188   : > { %882 = vrsqrt.f32 %v523_v19  ;;  %v509_v26 = vmul.f32 0.00390625, %v469_v1  ;;  %v510_v8 = vmul.f32 0.00390625, %v472_v25 }
 0x189   : > { %884 = vrsqrt.f32 %v524_v20 }
 0x18a   : > { %v525_v48 = vadd.f32 1e-12, %v509_v26  ;;  %v526_v37 = vadd.f32 1e-12, %v510_v8 }
 0x18b   : > { %v475_v40 = vpop.xlane.xlu1 %474  ;;  %v478_v4 = vpop.xlane.xlu0 %477 }
 0x18c   : > { %886 = vrsqrt.f32 %v525_v48  ;;  %v511_v45 = vmul.f32 0.00390625, %v475_v40  ;;  %v512_v30 = vmul.f32 0.00390625, %v478_v4 }
 0x18d   : > { %888 = vrsqrt.f32 %v526_v37 }
 0x18e   : > { %v881_v57 = vpop.eup %880  ;;  %v527_v58 = vadd.f32 1e-12, %v511_v45  ;;  %v528_v63 = vadd.f32 1e-12, %v512_v30 }
 0x18f   : > { %v554_v0 = vmul.f32 %v881_v57, %v1364_v10  ;;  %v555_v18 = vmul.f32 %v881_v57, %v1367_v13  ;;  %v481_v5 = vpop.xlane.xlu1 %480  ;;  %v484_v6 = vpop.xlane.xlu0 %483 }
 0x190   : > { %890 = vrsqrt.f32 %v527_v58  ;;  %v513_v50 = vmul.f32 0.00390625, %v481_v5  ;;  %v514_v59 = vmul.f32 0.00390625, %v484_v6 }
 0x191   : > { %v597_v62 = vmul.f32 %v1529_v43, %v554_v0  ;;  %v598_v32 = vmul.f32 %v1531_v17, %v555_v18  ;;  %892 = vrsqrt.f32 %v528_v63 }
 0x192   : > { %v883_v33 = vpop.eup %882  ;;  %v529_v19 = vadd.f32 1e-12, %v513_v50  ;;  %v530_v20 = vadd.f32 1e-12, %v514_v59 }
 0x193   : > { %v885_v1 = vpop.eup %884  ;;  %v640_v25 = vadd.f32 %v1533_v60, %v597_v62  ;;  %v641_v10 = vadd.f32 %v1535_v61, %v598_v32  ;;  %v556_v13 = vmul.f32 %v883_v33, %v1384_v29  ;;  %v557_v26 = vmul.f32 %v883_v33, %v1387_v12  ;;  %v487_v8 = vpop.xlane.xlu1 %486 }
 0x194   : > { %v490_v23 = vpop.xlane.xlu0 %489  ;;  %v558_v27 = vmul.f32 %v885_v1, %v1370_v14  ;;  %v559_v47 = vmul.f32 %v885_v1, %v1373_v15  ;;  %894 = vrsqrt.f32 %v529_v19  ;;  %v515_v48 = vmul.f32 0.00390625, %v487_v8 }
 0x195   : > { %672 = vst [vmem:[%s1549_s9] sm:$0xff] %v640_v25  ;;  %673 = vst [vmem:[%s1549_s9 + $0x8] sm:$0xff] %v641_v10  ;;  %v599_v37 = vmul.f32 %v1529_v43, %v556_v13  ;;  %v600_v29 = vmul.f32 %v1531_v17, %v557_v26  ;;  %896 = vrsqrt.f32 %v530_v20  ;;  %v516_v12 = vmul.f32 0.00390625, %v490_v23 }
 0x196   : > { %v887_v40 = vpop.eup %886  ;;  %v601_v14 = vmul.f32 %v1529_v43, %v558_v27  ;;  %v602_v15 = vmul.f32 %v1531_v17, %v559_v47  ;;  %v531_v4 = vadd.f32 1e-12, %v515_v48 }
 0x197   : > { %v889_v44 = vpop.eup %888  ;;  %v642_v45 = vadd.f32 %v1533_v60, %v599_v37  ;;  %v643_v30 = vadd.f32 %v1535_v61, %v600_v29  ;;  %v560_v57 = vmul.f32 %v887_v40, %v1390_v31  ;;  %v561_v58 = vmul.f32 %v887_v40, %v1393_v34  ;;  %v493_v63 = vpop.xlane.xlu1 %492 }
 0x198   : > { %v496_v0 = vpop.xlane.xlu0 %495  ;;  %v644_v18 = vadd.f32 %v1533_v60, %v601_v14  ;;  %v645_v5 = vadd.f32 %v1535_v61, %v602_v15  ;;  %v562_v6 = vmul.f32 %v889_v44, %v1404_v28  ;;  %v563_v50 = vmul.f32 %v889_v44, %v1407_v49 }
 0x199   : > { %674 = vst [vmem:[%s1549_s9 + $0x10] sm:$0xff] %v642_v45  ;;  %675 = vst [vmem:[%s1549_s9 + $0x18] sm:$0xff] %v643_v30  ;;  %v603_v59 = vmul.f32 %v1529_v43, %v560_v57  ;;  %v604_v62 = vmul.f32 %v1531_v17, %v561_v58  ;;  %898 = vrsqrt.f32 %v531_v4  ;;  %v532_v31 = vadd.f32 1e-12, %v516_v12 }
 0x19a   : > { %v891_v32 = vpop.eup %890  ;;  %676 = vst [vmem:[%s1549_s9 + $0x20] sm:$0xff] %v644_v18  ;;  %677 = vst [vmem:[%s1549_s9 + $0x28] sm:$0xff] %v645_v5  ;;  %v605_v34 = vmul.f32 %v1529_v43, %v562_v6  ;;  %v606_v33 = vmul.f32 %v1531_v17, %v563_v50  ;;  %v517_v28 = vmul.f32 0.00390625, %v493_v63  ;;  %v518_v19 = vmul.f32 0.00390625, %v496_v0 }
 0x19b   : > { %v893_v49 = vpop.eup %892  ;;  %v646_v20 = vadd.f32 %v1533_v60, %v603_v59  ;;  %v647_v1 = vadd.f32 %v1535_v61, %v604_v62  ;;  %v564_v25 = vmul.f32 %v891_v32, %v1410_v51  ;;  %v565_v10 = vmul.f32 %v891_v32, %v1413_v52  ;;  %v499_v13 = vpop.xlane.xlu1 %498 }
 0x19c   : > { %v648_v26 = vadd.f32 %v1533_v60, %v605_v34  ;;  %v649_v8 = vadd.f32 %v1535_v61, %v606_v33  ;;  %v566_v23 = vmul.f32 %v893_v49, %v1424_v2  ;;  %v567_v27 = vmul.f32 %v893_v49, %v1427_v3  ;;  %v502_v44 = vpop.xlane.xlu0 %501 }
 0x19d   : > { %678 = vst [vmem:[%s1549_s9 + $0x30] sm:$0xff] %v646_v20  ;;  %679 = vst [vmem:[%s1549_s9 + $0x38] sm:$0xff] %v647_v1  ;;  %v607_v47 = vmul.f32 %v1529_v43, %v564_v25  ;;  %v608_v48 = vmul.f32 %v1531_v17, %v565_v10  ;;  %900 = vrsqrt.f32 %v532_v31  ;;  %v533_v37 = vadd.f32 1e-12, %v517_v28 }
 0x19e   : > { %v895_v51 = vpop.eup %894  ;;  %680 = vst [vmem:[%s1549_s9 + $0x40] sm:$0xff] %v648_v26  ;;  %681 = vst [vmem:[%s1549_s9 + $0x48] sm:$0xff] %v649_v8  ;;  %v609_v52 = vmul.f32 %v1529_v43, %v566_v23  ;;  %v610_v29 = vmul.f32 %v1531_v17, %v567_v27  ;;  %v534_v2 = vadd.f32 1e-12, %v518_v19  ;;  %v519_v12 = vmul.f32 0.00390625, %v499_v13 }
 0x19f   : > { %v897_v3 = vpop.eup %896  ;;  %v650_v40 = vadd.f32 %v1533_v60, %v607_v47  ;;  %v651_v14 = vadd.f32 %v1535_v61, %v608_v48  ;;  %v568_v15 = vmul.f32 %v895_v51, %v1430_v9  ;;  %v569_v4 = vmul.f32 %v895_v51, %v1433_v16  ;;  %v505_v63 = vpop.xlane.xlu1 %504 }
 0x1a0   : > { %v652_v45 = vadd.f32 %v1533_v60, %v609_v52  ;;  %v653_v30 = vadd.f32 %v1535_v61, %v610_v29  ;;  %v570_v57 = vmul.f32 %v897_v3, %v1444_v7  ;;  %v571_v58 = vmul.f32 %v897_v3, %v1447_v11 }
 0x1a1   : > { %682 = vst [vmem:[%s1549_s9 + $0x50] sm:$0xff] %v650_v40  ;;  %683 = vst [vmem:[%s1549_s9 + $0x58] sm:$0xff] %v651_v14  ;;  %v611_v0 = vmul.f32 %v1529_v43, %v568_v15  ;;  %v612_v18 = vmul.f32 %v1531_v17, %v569_v4  ;;  %902 = vrsqrt.f32 %v533_v37  ;;  %v535_v9 = vadd.f32 1e-12, %v519_v12 }
 0x1a2   : > { %684 = vst [vmem:[%s1549_s9 + $0x60] sm:$0xff] %v652_v45  ;;  %685 = vst [vmem:[%s1549_s9 + $0x68] sm:$0xff] %v653_v30  ;;  %v613_v16 = vmul.f32 %v1529_v43, %v570_v57  ;;  %v614_v5 = vmul.f32 %v1531_v17, %v571_v58  ;;  %904 = vrsqrt.f32 %v534_v2  ;;  %v520_v7 = vmul.f32 0.00390625, %v502_v44 }
 0x1a3   : > { %v899_v11 = vpop.eup %898  ;;  %v654_v6 = vadd.f32 %v1533_v60, %v611_v0  ;;  %v655_v50 = vadd.f32 %v1535_v61, %v612_v18  ;;  %906 = vrsqrt.f32 %v535_v9  ;;  %v521_v59 = vmul.f32 0.00390625, %v505_v63 }
 0x1a4   : > { %v656_v62 = vadd.f32 %v1533_v60, %v613_v16  ;;  %v657_v31 = vadd.f32 %v1535_v61, %v614_v5  ;;  %v572_v32 = vmul.f32 %v899_v11, %v1450_v35  ;;  %v573_v34 = vmul.f32 %v899_v11, %v1453_v36 }
 0x1a5   : > { %686 = vst [vmem:[%s1549_s9 + $0x70] sm:$0xff] %v654_v6  ;;  %687 = vst [vmem:[%s1549_s9 + $0x78] sm:$0xff] %v655_v50  ;;  %v536_v33 = vadd.f32 1e-12, %v520_v7  ;;  %v537_v28 = vadd.f32 1e-12, %v521_v59 }
 0x1a6   : > { %688 = vst [vmem:[%s1549_s9 + $0x80] sm:$0xff] %v656_v62  ;;  %689 = vst [vmem:[%s1549_s9 + $0x88] sm:$0xff] %v657_v31  ;;  %v615_v19 = vmul.f32 %v1529_v43, %v572_v32  ;;  %v616_v49 = vmul.f32 %v1531_v17, %v573_v34 }
 0x1a7   : > { %v901_v20 = vpop.eup %900  ;;  %908 = vrsqrt.f32 %v536_v33 }
 0x1a8   : > { %v658_v1 = vadd.f32 %v1533_v60, %v615_v19  ;;  %v659_v35 = vadd.f32 %v1535_v61, %v616_v49  ;;  %v574_v36 = vmul.f32 %v901_v20, %v1464_v46  ;;  %v575_v25 = vmul.f32 %v901_v20, %v1467_v24 }
 0x1a9   : > { %910 = vrsqrt.f32 %v537_v28 }
 0x1aa   : > { %690 = vst [vmem:[%s1549_s9 + $0x90] sm:$0xff] %v658_v1  ;;  %691 = vst [vmem:[%s1549_s9 + $0x98] sm:$0xff] %v659_v35  ;;  %v617_v10 = vmul.f32 %v1529_v43, %v574_v36  ;;  %v618_v13 = vmul.f32 %v1531_v17, %v575_v25 }
 0x1ab   : > { %v903_v26 = vpop.eup %902 }
 0x1ac   : > { %v905_v8 = vpop.eup %904  ;;  %v660_v23 = vadd.f32 %v1533_v60, %v617_v10  ;;  %v661_v27 = vadd.f32 %v1535_v61, %v618_v13  ;;  %v576_v47 = vmul.f32 %v903_v26, %v1470_v55  ;;  %v577_v46 = vmul.f32 %v903_v26, %v1473_v56 }
 0x1ad   : > { %v907_v48 = vpop.eup %906  ;;  %v578_v24 = vmul.f32 %v905_v8, %v1484_v38  ;;  %v579_v37 = vmul.f32 %v905_v8, %v1487_v39 }
 0x1ae   : > { %692 = vst [vmem:[%s1549_s9 + $0xa0] sm:$0xff] %v660_v23  ;;  %693 = vst [vmem:[%s1549_s9 + $0xa8] sm:$0xff] %v661_v27  ;;  %v619_v51 = vmul.f32 %v1529_v43, %v576_v47  ;;  %v620_v52 = vmul.f32 %v1531_v17, %v577_v46  ;;  %v580_v29 = vmul.f32 %v907_v48, %v1490_v21 }
 0x1af   : > { %v581_v2 = vmul.f32 %v907_v48, %v1493_v22  ;;  %v621_v55 = vmul.f32 %v1529_v43, %v578_v24  ;;  %v622_v56 = vmul.f32 %v1531_v17, %v579_v37 }
 0x1b0   : > { %v662_v38 = vadd.f32 %v1533_v60, %v619_v51  ;;  %v663_v39 = vadd.f32 %v1535_v61, %v620_v52  ;;  %v623_v12 = vmul.f32 %v1529_v43, %v580_v29 }
 0x1b1   : > { %v624_v3 = vmul.f32 %v1531_v17, %v581_v2  ;;  %v909_v40 = vpop.eup %908  ;;  %v664_v21 = vadd.f32 %v1533_v60, %v621_v55  ;;  %v665_v22 = vadd.f32 %v1535_v61, %v622_v56 }
 0x1b2   : > { %694 = vst [vmem:[%s1549_s9 + $0xb0] sm:$0xff] %v662_v38  ;;  %695 = vst [vmem:[%s1549_s9 + $0xb8] sm:$0xff] %v663_v39  ;;  %v666_v14 = vadd.f32 %v1533_v60, %v623_v12  ;;  %v582_v4 = vmul.f32 %v909_v40, %v1504_v53  ;;  %v583_v44 = vmul.f32 %v909_v40, %v1507_v54 }
 0x1b3   : > { %v667_v15 = vadd.f32 %v1535_v61, %v624_v3  ;;  %v911_v45 = vpop.eup %910  ;;  %696 = vst [vmem:[%s1549_s9 + $0xc0] sm:$0xff] %v664_v21  ;;  %697 = vst [vmem:[%s1549_s9 + $0xc8] sm:$0xff] %v665_v22 }
 0x1b4   : > { %698 = vst [vmem:[%s1549_s9 + $0xd0] sm:$0xff] %v666_v14  ;;  %v625_v30 = vmul.f32 %v1529_v43, %v582_v4  ;;  %v626_v57 = vmul.f32 %v1531_v17, %v583_v44  ;;  %v584_v58 = vmul.f32 %v911_v45, %v1510_v41  ;;  %v585_v53 = vmul.f32 %v911_v45, %v1513_v42 }
 0x1b5   : > { %699 = vst [vmem:[%s1549_s9 + $0xd8] sm:$0xff] %v667_v15 }
 0x1b6   : > { %v668_v54 = vadd.f32 %v1533_v60, %v625_v30  ;;  %v669_v63 = vadd.f32 %v1535_v61, %v626_v57  ;;  %v627_v0 = vmul.f32 %v1529_v43, %v584_v58  ;;  %v628_v18 = vmul.f32 %v1531_v17, %v585_v53 }
 0x1b8   : > { %700 = vst [vmem:[%s1549_s9 + $0xe0] sm:$0xff] %v668_v54  ;;  %701 = vst [vmem:[%s1549_s9 + $0xe8] sm:$0xff] %v669_v63  ;;  %v670_v41 = vadd.f32 %v1533_v60, %v627_v0  ;;  %v671_v42 = vadd.f32 %v1535_v61, %v628_v18 }
 0x1ba   : > { %702 = vst [vmem:[%s1549_s9 + $0xf0] sm:$0xff] %v670_v41  ;;  %703 = vst [vmem:[%s1549_s9 + $0xf8] sm:$0xff] %v671_v42 }
 0x1bb   : > { %983 = shalt.err (!%p980_p7)
}
 0x1bc   : > { %s984_s5 = scalar_lea.hbm %s1668_s26, 4096  ;;  %s988_s23 = scalar_lea.hbm %s1724_s4, 8192 }
 0x1bd   : > { %p985_p9 = scmp.ne.s32.totalorder %s1668_s26, %s984_s5  ;;  %p989_p5 = scmp.lt.u32.totalorder %s1668_s26, %s1724_s4 }
 0x1be   : > { %p990_p11 = scmp.lt.u32.totalorder %s988_s23, %s984_s5  ;;  %p992_p4 = scmp.lt.u32.totalorder %s984_s5, %s1668_s26 }
 0x1bf   : > { %p986_p1 = pnand %p985_p9, %p1168_p12 }
 0x1c0   : > { %p991_p2 = por %p990_p11, %p989_p5 }
 0x1c1   : > { %p987_p0 = pneg %p986_p1 }
 0x1c2   : > { %p993_p6 = por %p992_p4, %p991_p2 }
 0x1c4   : > { %p994_p8 = pnand %p993_p6, %p987_p0 }
 0x1c6   : > { %997 = shalt.err (!%p994_p8)
}
 0x1c7   : > { %s1047_s9 = smov 256   ;;  %s1048_s28 = smov 16  }
 0x1c8   : > { %825 = dma.vmem_to_hbm [thread:$0]  (%p1168_p12), %s1670_s10, 4096, %s1668_s26, %s705_s19, %s1047_s9, %s1047_s9, %s1048_s28  }
 0x1c9 PF: > { %s733_s6 = sand.u32 1, %s1028_s15   ;;  %p1739_p10 = scmp.ne.s32.totalorder %s1729_s22, 0 }
 0x1ca   : > { %p1740_p13 = scmp.ge.s32.totalorder %s1040_s18, 2  ;;  %s734_s7 = scalar_lea.sflag [#allocation4], %s733_s6 }
 0x1cc   : > { %p836_p3 = pnand %p1740_p13, %p1739_p10 }
 0x1ce   : > { %1023 = dma.done.wait (!%p836_p3), %s734_s7, 4096  }
 0x1cf   : > { %1025 = vsyncadd (!%p836_p3), %s734_s7, 4294963200  ;;  %p18_p7 = scmp.ge.s32.totalorder %s1130_s27, 4   ;;  %s1741_s15 = smov %s1032_s16 }
 0x1d0   : > { %s1742_s16 = smov %s1036_s17  ;;  %s1743_s17 = smov %s1164_s24 }
 0x1d1   : > { %s1744_s18 = smov %s1130_s27  ;;  %20 = sbr.rel (!%p18_p7) target bundleno = 6 (0x6), region = 85 }
 0x1d8   :  { %739 = vsyncpa [#allocation3], 1 }
 0x1d9   :  { %741 = vsyncpa [#allocation3 + $0x1], 1 }
 0x1da   :  { %742 = vsyncpa [#allocation6], 1 }
 0x1db   :  { %743 = vsyncpa [#allocation4], 1 }
 0x1dc   :  { %745 = vsyncpa [#allocation4 + $0x1], 1 }

</bundles_post_ra>
